<compile_context>
chip_gen: v5e
topology: v5e:2x2
jax: 0.10.0
libtpu: 0.0.40
codegen_flags: <defaults>
</compile_context>

<pallas_src>
import jax
import jax.numpy as jnp
from jax.experimental import pallas as pl
from jax.experimental.pallas import tpu as pltpu


class SampleMetaInformation:
    """Minimal stand-in for PytorchRouting's SampleMetaInformation."""

    def __init__(self, task=None):
        self.task = task
        self.actions = []
        self.states = []

    def __repr__(self):
        return f"SampleMetaInformation(task={self.task!r})"


# ---------------------------------------------------------------------------
# Pallas identity (tiled HBM copy) -- kept only for `force_kernel` validation.
# ---------------------------------------------------------------------------

_LANES = 128
_TARGET_TILE_BYTES = 4 * 1024 * 1024     # ~4 MiB/tile: 2x(in+out) buffers =
                                         # 16 MiB, under the 32 MiB limit we
                                         # request explicitly (safe on
                                         # v5e/v6e/v7x physical VMEM).
_VMEM_LIMIT_BYTES = 32 * 1024 * 1024


def _copy_kernel(x_ref, o_ref):
    # Straight vld -> vst copy; no casts, no masking (lane-dense blocks).
    o_ref[...] = x_ref[...]


def _collapse_2d(n):
    """Pick the widest lane-dense width (multiple of 128) that divides n."""
    for c in (32 * _LANES, 16 * _LANES, 8 * _LANES, 4 * _LANES,
              2 * _LANES, _LANES):
        if n % c == 0:
            return n // c, c
    return None


def _sublane_pack(dtype):
    """Native sublane packing for the dtype (8 for 4B, 16 for 2B, 32 for 1B)."""
    itemsize = jnp.dtype(dtype).itemsize
    return max(8, 32 // itemsize)


def _exact_tile_rows(rows, target_rows, pack):
    """Largest exact divisor of `rows` that is <= target_rows, preferring
    sublane-pack-aligned divisors (avoids a masked epilogue tile)."""
    if target_rows >= rows:
        return rows
    best = 1
    d = 1
    while d * d <= rows:
        if rows % d == 0:
            for cand in (d, rows // d):
                if cand <= target_rows:
                    better = (cand % pack == 0, cand)
                    current = (best % pack == 0, best)
                    if better > current:
                        best = cand
        d += 1
    return best


def _identity_pallas(x, force_kernel=False):
    """Bit-exact identity of `x`.

    The fastest bit-exact identity is no kernel at all, so unless
    `force_kernel=True` we return `x` untouched (zero HBM traffic).  The
    forced path runs a tiled, lane-dense, double-buffered Pallas copy so the
    Pallas lowering stays exercised and validated on TPU.
    """
    if not force_kernel or x.size == 0:
        return x

    n = x.size
    itemsize = jnp.dtype(x.dtype).itemsize
    pack = _sublane_pack(x.dtype)

    collapsed = _collapse_2d(n)
    if collapsed is None:
        # Cannot collapse to a 128-multiple without padding: copy the whole
        # (flattened-to-2D) array as a single full-extent block.  Full-array
        # blocks are exempt from the (8,128) divisibility rule.
        rows, cols = (n // x.shape[-1], x.shape[-1]) if x.ndim >= 1 else (1, n)
        x2d = x.reshape(rows, cols)
        out2d = pl.pallas_call(
            _copy_kernel,
            out_shape=jax.ShapeDtypeStruct((rows, cols), x.dtype),
            in_specs=[pl.BlockSpec((rows, cols), lambda: (0, 0))],
            out_specs=pl.BlockSpec((rows, cols), lambda: (0, 0)),
            compiler_params=pltpu.CompilerParams(
                vmem_limit_bytes=_VMEM_LIMIT_BYTES,
            ),
        )(x2d)
        return out2d.reshape(x.shape)

    rows, cols = collapsed

    # Rows per tile: exact divisor of rows, sublane-pack aligned if possible,
    # ~4 MiB per tile.
    target_rows = max(pack, (_TARGET_TILE_BYTES // (cols * itemsize)))
    tile_rows = _exact_tile_rows(rows, target_rows, pack)
    grid_rows = rows // tile_rows        # exact: no masked epilogue tile

    x2d = x.reshape(rows, cols)          # zero-cost reshape (no pad, no slice)

    out2d = pl.pallas_call(
        _copy_kernel,
        out_shape=jax.ShapeDtypeStruct((rows, cols), x.dtype),
        grid=(grid_rows,),
        in_specs=[pl.BlockSpec((tile_rows, cols), lambda i: (i, 0))],
        out_specs=pl.BlockSpec((tile_rows, cols), lambda i: (i, 0)),
        compiler_params=pltpu.CompilerParams(
            dimension_semantics=("parallel",),   # shards across v7x's 2 TCs
            vmem_limit_bytes=_VMEM_LIMIT_BYTES,
        ),
    )(x2d)

    return out2d.reshape(x.shape)


# ---------------------------------------------------------------------------
# Module forward
# ---------------------------------------------------------------------------

def initialization_forward(xs, tasks=()):
    """JAX/Pallas equivalent of Initialization.forward.

    Returns the (xs, mxs, None) triplet exactly as the PyTorch module does.
    `xs` is passed through untouched (the op is a pure identity; any kernel
    would only add HBM traffic and launch overhead).
    """
    if tasks:
        mxs = [SampleMetaInformation(task=t) for t in tasks]
    else:
        # one meta-info object per leading-axis sample, as in `for _ in xs`
        mxs = [SampleMetaInformation() for _ in range(xs.shape[0])]
    return (xs, mxs, None)


# ---------------------------------------------------------------------------
# Self-test
# ---------------------------------------------------------------------------

if __name__ == "__main__":
    key = jax.random.PRNGKey(0)
    k1, k2 = jax.random.split(key)

    # Small NCHW input consistent with a routed-conv pipeline.
    x_small = jax.random.normal(k1, (2, 4, 16, 16), dtype=jnp.float32)

    # 1) Default forward: pure pass-through (the optimal identity).
    xs_out, mxs, actions = initialization_forward(x_small)
    jax.block_until_ready(xs_out)
    assert xs_out.shape == x_small.shape and xs_out.dtype == x_small.dtype
    assert bool(jnp.array_equal(xs_out, x_small))
    assert len(mxs) == x_small.shape[0]
    assert actions is None

    # 2) `tasks` branch.
    xs_out2, mxs2, actions2 = initialization_forward(x_small, tasks=(0, 1))
    jax.block_until_ready(xs_out2)
    assert len(mxs2) == 2 and mxs2[1].task == 1 and actions2 is None

    # 3) Force the Pallas copy kernel on the small input (single lane-dense
    #    block, no padding) to verify it compiles and runs on TPU.
    y_small = _identity_pallas(x_small, force_kernel=True)
    jax.block_until_ready(y_small)
    assert y_small.shape == x_small.shape and y_small.dtype == x_small.dtype
    assert bool(jnp.array_equal(y_small, x_small))

    # 4) Moderately larger input (4 MiB) exercises the tiled, exact-divisor,
    #    lane-dense kernel path (forced; the forward itself never copies).
    x_big = jax.random.normal(k2, (8, 8, 128, 128), dtype=jnp.float32)
    y_big = _identity_pallas(x_big, force_kernel=True)
    jax.block_until_ready(y_big)
    assert bool(jnp.array_equal(y_big, x_big))

    # 5) Non-128-multiple size: force_kernel now really runs a kernel
    #    (single full-array block) instead of silently skipping.
    x_odd = jax.random.normal(k1, (3, 5, 7), dtype=jnp.float32)
    y_odd = _identity_pallas(x_odd, force_kernel=True)
    jax.block_until_ready(y_odd)
    assert bool(jnp.array_equal(y_odd, x_odd))

    # Forward on the larger input (fast path) for completeness.
    xs_big, mxs_big, actions_big = initialization_forward(x_big)
    jax.block_until_ready(xs_big)
    assert bool(jnp.array_equal(xs_big, x_big))
    assert len(mxs_big) == x_big.shape[0]
    assert actions_big is None

    print("KERNEL_OK")
</pallas_src>

<mosaic_0001>
module attributes {stable_mosaic.version = 11 : i64} {
  func.func @_copy_kernel(%arg0: i32, %arg1: memref<1x2048xf32, #tpu.memory_space<vmem>>, %arg2: memref<1x2048xf32, #tpu.memory_space<vmem>>) attributes {dimension_semantics = [#tpu.dimension_semantics<parallel>], iteration_bounds = array<i64: 1>, scalar_prefetch = 0 : i64, scratch_operands = 0 : i64, tpu.core_type = #tpu.core_type<tc>, window_params = [{transform_indices = @transform_0, window_bounds = array<i64: 1, 2048>}, {transform_indices = @transform_1, window_bounds = array<i64: 1, 2048>}]} {
    %c0 = arith.constant 0 : index
    %c0_0 = arith.constant 0 : index
    %0 = vector.load %arg1[%c0, %c0_0] : memref<1x2048xf32, #tpu.memory_space<vmem>>, vector<1x2048xf32>
    %c0_1 = arith.constant 0 : index
    %c0_2 = arith.constant 0 : index
    %1 = vector.load %arg2[%c0_1, %c0_2] : memref<1x2048xf32, #tpu.memory_space<vmem>>, vector<1x2048xf32>
    tpu.vector_store %arg2[%c0_1, %c0_2], %0 {strides = array<i32>} : memref<1x2048xf32, #tpu.memory_space<vmem>>, vector<1x2048xf32>,
    return
  }
  func.func @transform_0(%arg0: i32) -> (i32, i32) {
    %c0_i32 = arith.constant 0 : i32
    %c0_i32_0 = arith.constant 0 : i32
    return %arg0, %c0_i32 : i32, i32
  }
  func.func @transform_1(%arg0: i32) -> (i32, i32) {
    %c0_i32 = arith.constant 0 : i32
    %c0_i32_0 = arith.constant 0 : i32
    return %arg0, %c0_i32 : i32, i32
  }
}

</mosaic_0001>

<bundles_post_ra>
// kernel: tpu_custom_call.1
= control target key start
LH: loop header
LB: loop body
LE: loop exit
PB: predicated region body
PF: predicated region fallthrough
CT: control target
= control target key end

     0   :  { %6 = vsyncpa [#allocation3], 0  ;;  %s116_s0 = inlined_call_operand.hbm [shape: f32[1,2048], index: 0, kind: input, shape index: {}]   ;;  %s117_s1 = inlined_call_operand.hbm [shape: f32[1,2048], index: 1, kind: output, shape index: {}]  }
   0x1   :  { %7 = vsyncpa [#allocation4], 0  ;;  %s13_s8 = sshll.u32 %s116_s0, 4  ;;  %s98_s9 = smov [#allocation2]   ;;  %s14_s8 = int_to_ptr.hbm [resolvable:$true] %s13_s8 }
   0x2   :  { %s15_s10 = sshll.u32 %s98_s9, 4  ;;  %s16_s10 = int_to_ptr.vmem [resolvable:$true] %s15_s10 }
   0x3   :  { %18 = dma.hbm_to_vmem [thread:$0]  %s14_s8, 256, %s16_s10, [#allocation3]  }
   0x4   :  { %94 = dma.done.wait [#allocation3], 256  }
   0x5   :  { %95 = vsyncadd [#allocation3], 4294967040  ;;  %s99_s11 = smov [#allocation5]   ;;  %s34_s15 = sshll.u32 %s117_s1, 4  ;;  %v23_v0 = vld [vmem:[#allocation2] sm:$0xff]  ;;  %v24_v1 = vld [vmem:[#allocation2 + $0x8] sm:$0xff]  ;;  %s35_s15 = int_to_ptr.hbm [resolvable:$true] %s34_s15 }
   0x6   :  { %s32_s12 = sshll.u32 %s99_s11, 4  ;;  %25 = vst [vmem:[#allocation5] sm:$0xff] %v23_v0  ;;  %s33_s12 = int_to_ptr.vmem [resolvable:$true] %s32_s12 }
   0x7   :  { %26 = vst [vmem:[#allocation5 + $0x8] sm:$0xff] %v24_v1 }
   0x8   :  { %37 = dma.vmem_to_hbm [thread:$0]  %s33_s12, 256, %s35_s15, [#allocation4]  }
   0x9   :  { %96 = dma.done.wait [#allocation4], 256  }
   0xa   :  { %97 = vsyncadd [#allocation4], 4294967040 }
   0xb   :  { %42 = vsyncpa [#allocation3], 1 }
   0xc   :  { %43 = vsyncpa [#allocation4], 1 }

</bundles_post_ra>
